<compile_context>
chip_gen: v7x
topology: tpu7x:2x2x1
jax: 0.10.0
libtpu: 0.0.40
codegen_flags: <defaults>
</compile_context>

<pallas_src>
import jax
import jax.numpy as jnp
from jax.experimental import pallas as pl
from jax.experimental.pallas import tpu as pltpu


_VMEM_BUDGET_BYTES = 48 * 1024 * 1024  # conservative: fits v7x's 64 MiB VMEM


def _round_up(a, b):
    return ((a + b - 1) // b) * b


def _pick_tiles(M, K, N, x_bytes, t_bytes, budget):
    """Pick (tm, tn, vmem_needed).

    tm: full M when small, else 256 (multiple of 8 for f32 sublanes).
    tn: largest of {1024, 512, 256, 128} (multiples of 128, lane-dense output)
        whose double-buffered working set fits the VMEM budget; full N when
        n_genes < 128.
    """
    tm = M if M <= 256 else 256
    if N <= 128:
        tn = N
    else:
        tn = 128
        n_cap = _round_up(N, 128)
        for cand in (1024, 512, 256, 128):
            if cand > n_cap:
                continue
            need = 2 * tm * K * x_bytes + 2 * K * cand * t_bytes + 2 * tm * cand * 4
            if need <= budget:
                tn = cand
                break
    need = 2 * tm * K * x_bytes + 2 * K * tn * t_bytes + 2 * tm * tn * 4
    return tm, tn, need


def _set2gene_kernel(x_ref, table_ref, o_ref):
    # (tm, K) @ (K, tn) -> (tm, tn), f32 accumulation on the MXU.
    x = x_ref[...]
    # Upcast of a narrow (e.g. bf16) table tile happens in VMEM/VPU; the HBM
    # stream stays at the narrow dtype, which is the bandwidth win.
    t = table_ref[...].astype(x.dtype)
    o_ref[...] = jnp.dot(x, t, preferred_element_type=jnp.float32)


def set2gene_forward(x, tf_gene_table, *, table_dtype=jnp.bfloat16,
                     tm=None, tn=None,
                     vmem_budget_bytes=_VMEM_BUDGET_BYTES):
    """Pallas implementation of Set2Gene.forward.

    x:              (M, K) float32
    tf_gene_table:  (K, N) float32 (0/1 or small weights)
    table_dtype:    narrow streaming dtype for the table (exact for 0/1
                    tables); pass None to keep the original precision.
    returns (p_m, None) with p_m (M, N) float32.
    """
    M, K = x.shape
    K2, N = tf_gene_table.shape
    assert K == K2, "x inner dim must match tf_gene_table rows"

    # Narrow the dominant K x N HBM stream (exact for a binary table).
    if table_dtype is not None and tf_gene_table.dtype != table_dtype:
        tf_gene_table = tf_gene_table.astype(table_dtype)

    x_bytes = jnp.dtype(x.dtype).itemsize
    t_bytes = jnp.dtype(tf_gene_table.dtype).itemsize

    auto_tm, auto_tn, _ = _pick_tiles(M, K, N, x_bytes, t_bytes, vmem_budget_bytes)
    tm = auto_tm if tm is None else tm
    tn = auto_tn if tn is None else tn

    # Explicit scoped-VMEM budget: double-buffered x tile + table tile +
    # output tile, plus headroom; capped at v7x's 64 MiB physical VMEM.
    need = 2 * tm * K * x_bytes + 2 * K * tn * t_bytes + 2 * tm * tn * 4
    vmem_limit = int(min(max(need + 4 * 1024 * 1024, 16 * 1024 * 1024),
                         64 * 1024 * 1024))

    # Genes (N) outer, batch (M) inner: the big table tile is DMA'd once per
    # N tile and stays resident across the inner batch loop.
    grid = (pl.cdiv(N, tn), pl.cdiv(M, tm))

    cost = pl.CostEstimate(
        flops=2 * M * K * N,
        transcendentals=0,
        bytes_accessed=M * K * x_bytes + K * N * t_bytes + M * N * 4,
    )

    p_m = pl.pallas_call(
        _set2gene_kernel,
        out_shape=jax.ShapeDtypeStruct((M, N), jnp.float32),
        grid_spec=pltpu.PrefetchScalarGridSpec(
            num_scalar_prefetch=0,
            grid=grid,
            in_specs=[
                # x: (tm, K) batch tile, full K; constant across the gene axis.
                pl.BlockSpec((tm, K), lambda j, i: (i, 0)),
                # table: full K, tiled along genes (N); constant across batch.
                pl.BlockSpec((K, tn), lambda j, i: (0, j)),
            ],
            out_specs=pl.BlockSpec((tm, tn), lambda j, i: (i, j)),
        ),
        compiler_params=pltpu.CompilerParams(
            dimension_semantics=("parallel", "parallel"),
            vmem_limit_bytes=vmem_limit,
        ),
        cost_estimate=cost,
    )(x, tf_gene_table)

    return p_m, None


if __name__ == "__main__":
    key = jax.random.PRNGKey(0)
    kx, kt, kx2, kt2 = jax.random.split(key, 4)

    # Small shapes consistent with the module: batch x gene-sets -> genes.
    batch, n_gene_sets, n_genes = 8, 32, 256
    x = jax.random.normal(kx, (batch, n_gene_sets), dtype=jnp.float32)
    # Deterministic "known gene set relationship" table (a fixed binary matrix
    # in the original module) -- exactly representable in bf16.
    tf_gene_table = (
        jax.random.uniform(kt, (n_gene_sets, n_genes), dtype=jnp.float32) > 0.7
    ).astype(jnp.float32)

    p_m, none_out = set2gene_forward(x, tf_gene_table)
    p_m = jax.block_until_ready(p_m)

    ref = x @ tf_gene_table
    assert none_out is None
    assert p_m.shape == (batch, n_genes)
    assert jnp.allclose(p_m, ref, atol=1e-4, rtol=1e-4)

    # Second config exercising batch (M) tiling (tm=256, 2 batch tiles) and a
    # wide lane-dense 1024-column gene tile.
    batch2, sets2, genes2 = 512, 64, 1024
    x2 = jax.random.normal(kx2, (batch2, sets2), dtype=jnp.float32)
    table2 = (
        jax.random.uniform(kt2, (sets2, genes2), dtype=jnp.float32) > 0.7
    ).astype(jnp.float32)

    p2, _ = set2gene_forward(x2, table2)
    p2 = jax.block_until_ready(p2)
    ref2 = x2 @ table2
    assert p2.shape == (batch2, genes2)
    assert jnp.allclose(p2, ref2, atol=1e-4, rtol=1e-4)

    print("KERNEL_OK")
</pallas_src>

<mosaic_0001>
module attributes {stable_mosaic.version = 11 : i64} {
  func.func @_set2gene_kernel(%arg0: i32, %arg1: i32, %arg2: memref<8x32xf32, #tpu.memory_space<vmem>>, %arg3: memref<32x256xbf16, #tpu.memory_space<vmem>>, %arg4: memref<8x256xf32, #tpu.memory_space<vmem>>) attributes {dimension_semantics = [#tpu.dimension_semantics<parallel>, #tpu.dimension_semantics<parallel>], iteration_bounds = array<i64: 1, 1>, scalar_prefetch = 0 : i64, scratch_operands = 0 : i64, tpu.core_type = #tpu.core_type<tc>, window_params = [{transform_indices = @transform_0, window_bounds = array<i64: 8, 32>}, {transform_indices = @transform_1, window_bounds = array<i64: 32, 256>}, {transform_indices = @transform_2, window_bounds = array<i64: 8, 256>}]} {
    %c0 = arith.constant 0 : index
    %c0_0 = arith.constant 0 : index
    %0 = vector.load %arg2[%c0, %c0_0] : memref<8x32xf32, #tpu.memory_space<vmem>>, vector<8x32xf32>
    %c0_1 = arith.constant 0 : index
    %c0_2 = arith.constant 0 : index
    %1 = vector.load %arg3[%c0_1, %c0_2] : memref<32x256xbf16, #tpu.memory_space<vmem>>, vector<32x256xbf16>
    %2 = arith.extf %1 : vector<32x256xbf16> to vector<32x256xf32>
    %cst = arith.constant dense<0.000000e+00> : vector<8x256xf32>
    %3 = tpu.matmul %0, %2, %cst {dimension_numbers = #tpu.dot_dimension_numbers<[1], [0], [0], [1], [0, 0, 1, 1], [], []>} : vector<8x32xf32>, vector<32x256xf32>, vector<8x256xf32> -> vector<8x256xf32>
    %c0_3 = arith.constant 0 : index
    %c0_4 = arith.constant 0 : index
    %4 = vector.load %arg4[%c0_3, %c0_4] : memref<8x256xf32, #tpu.memory_space<vmem>>, vector<8x256xf32>
    tpu.vector_store %arg4[%c0_3, %c0_4], %3 {strides = array<i32>} : memref<8x256xf32, #tpu.memory_space<vmem>>, vector<8x256xf32>,
    return
  }
  func.func @transform_0(%arg0: i32, %arg1: i32) -> (i32, i32) {
    %c0_i32 = arith.constant 0 : i32
    %c0_i32_0 = arith.constant 0 : i32
    return %arg1, %c0_i32 : i32, i32
  }
  func.func @transform_1(%arg0: i32, %arg1: i32) -> (i32, i32) {
    %c0_i32 = arith.constant 0 : i32
    %c0_i32_0 = arith.constant 0 : i32
    return %c0_i32, %arg0 : i32, i32
  }
  func.func @transform_2(%arg0: i32, %arg1: i32) -> (i32, i32) {
    %c0_i32 = arith.constant 0 : i32
    return %arg1, %arg0 : i32, i32
  }
}

</mosaic_0001>

<bundles_post_ra>
// kernel: tpu_custom_call.1
= control target key start
LH: loop header
LB: loop body
LE: loop exit
PB: predicated region body
PF: predicated region fallthrough
CT: control target
= control target key end

     0   :  { %7 = vsyncpa [#allocation3], 0  ;;  %s305_s0 = inlined_call_operand.hbm [shape: f32[8,32], index: 0, kind: input, shape index: {}]   ;;  %s306_s1 = inlined_call_operand.hbm [shape: bf16[32,256], index: 1, kind: input, shape index: {}]   ;;  %s307_s2 = inlined_call_operand.hbm [shape: f32[8,256], index: 2, kind: output, shape index: {}]  }
   0x1   :  { %8 = vsyncpa [#allocation6], 0 }
   0x2   :  { %9 = vsyncpa [#allocation4], 0  ;;  %s241_s9 = smov [#allocation2]   ;;  %s242_s11 = smov [#allocation5]  }
   0x3   :  { %s16_s10 = sshll.u32 %s241_s9, 4  ;;  %s25_s12 = sshll.u32 %s242_s11, 4  ;;  %s17_s10 = int_to_ptr.vmem [resolvable:$true] %s16_s10  ;;  %s262_s12 = int_to_ptr.vmem [resolvable:$true] %s25_s12 }
   0x4   :  { %s169_s15 = scalar_lea.hbm %s305_s0, 128 }
   0x5   :  { %p170_p0 = scmp.ne.s32.totalorder %s305_s0, %s169_s15  ;;  %p173_p1 = scmp.lt.u32.totalorder %s169_s15, %s305_s0 }
   0x7   :  { %p175_p2 = pnand %p173_p1, %p170_p0 }
   0x9   :  { %178 = shalt.err (!%p175_p2)
}
   0xa   :  { %s179_s20 = scalar_lea.vmem %s17_s10, 128  ;;  %p184_p4 = scmp.lt.s32.totalorder %s17_s10, %s17_s10 }
   0xb   :  { %p180_p3 = scmp.ne.s32.totalorder %s17_s10, %s179_s20  ;;  %p185_p5 = scmp.lt.s32.totalorder %s179_s20, %s179_s20 }
   0xd   :  { %p186_p6 = por %p185_p5, %p184_p4 }
   0xf   :  { %p187_p7 = pnand %p186_p6, %p180_p3 }
  0x11   :  { %190 = shalt.err (!%p187_p7)
}
  0x12   :  { %19 = dma.hbm_to_vmem [thread:$0]  %s305_s0, 128, %s17_s10, [#allocation3]  }
  0x13   :  { %s191_s25 = scalar_lea.hbm %s306_s1, 512 }
  0x14   :  { %p192_p8 = scmp.ne.s32.totalorder %s306_s1, %s191_s25  ;;  %p195_p9 = scmp.lt.u32.totalorder %s191_s25, %s306_s1 }
  0x16   :  { %p197_p10 = pnand %p195_p9, %p192_p8 }
  0x18   :  { %200 = shalt.err (!%p197_p10)
}
  0x19   :  { %s201_s30 = scalar_lea.vmem %s262_s12, 512  ;;  %p206_p12 = scmp.lt.s32.totalorder %s262_s12, %s262_s12 }
  0x1a   :  { %p202_p11 = scmp.ne.s32.totalorder %s262_s12, %s201_s30  ;;  %p207_p13 = scmp.lt.s32.totalorder %s201_s30, %s201_s30 }
  0x1c   :  { %p208_p0 = por %p207_p13, %p206_p12 }
  0x1e   :  { %p209_p1 = pnand %p208_p0, %p202_p11 }
  0x20   :  { %212 = shalt.err (!%p209_p1)
}
  0x21   :  { %s243_s0 = smov 128   ;;  %s244_s3 = smov 8  }
  0x22   :  { %31 = dma.hbm_to_vmem [thread:$0]  %s306_s1, 512, %s262_s12, [#allocation6], %s243_s0, %s243_s0, %s244_s3  }
  0x23   :  { %235 = dma.done.wait [#allocation3], 128  }
  0x24   :  { %236 = vsyncadd [#allocation3], 4294967168 }
  0x25   :  { %237 = dma.done.wait [#allocation6], 512  }
  0x26   :  { %238 = vsyncadd [#allocation6], 4294966784  ;;  %v245_v0 = vmov 0.0   ;;  %v163_v1 = vld [vmem:[#allocation5 + $0x4] ss:$8 sps:$4 sm:$0xff]   ;;  %v38_v5 = vld [vmem:[#allocation2] sm:$0xff] }
  0x27   :  { %119 = vmatprep.mubr.f32.mxu0 %v245_v0  ;;  %v165_v2 = vld [vmem:[#allocation5] ss:$8 sps:$4 sm:$0xff]   ;;  %146 = vmatprep.subr.bf16.mxu0 %v163_v1  ;;  %v166_v3 = vld [vmem:[#allocation5 + $0x14] ss:$8 sps:$4 sm:$0xff]   ;;  %v168_v4 = vld [vmem:[#allocation5 + $0x10] ss:$8 sps:$4 sm:$0xff]  }
  0x28   :  { %148 = vmatpush1.bf16.msra.mxu0 %v165_v2  ;;  %vm51_vm0 = vcmask 261120   ;;  %s246_s6 = smov [#allocation7]  }
  0x29   :  { %150 = vmatprep.subr.bf16.mxu0 %v166_v3  ;;  %s134_s7 = sshll.u32 %s246_s6, 4  ;;  %s135_s7 = int_to_ptr.vmem [resolvable:$true] %s134_s7 }
  0x2a   :  { %s213_s1 = scalar_lea.vmem %s135_s7, 256  ;;  %p218_p3 = scmp.lt.s32.totalorder %s135_s7, %s135_s7 }
  0x2b   :  { %p214_p2 = scmp.ne.s32.totalorder %s135_s7, %s213_s1  ;;  %p219_p4 = scmp.lt.s32.totalorder %s213_s1, %s213_s1 }
  0x2c   :  { %152 = vmatpush1.bf16.msra.mxu0 %v168_v4 }
  0x2d   :  { %p220_p5 = por %p219_p4, %p218_p3 }
  0x2f   :  { %144 = vmatmul.mubr.msk.f32.vlgmr.msra.gmra.mrb[0].mxu0 %vm51_vm0, %v38_v5  ;;  %p221_p6 = pnand %p220_p5, %p214_p2 }
 0x102   :  { %v121_v6 = vpop.f32.mrb[0].mxu0 }
 0x103   :  { %126 = vst [vmem:[#allocation7] sm:$0xff] %v121_v6  ;;  %v123_v7 = vpop.f32.mrb[1].mxu0 }
 0x104   :  { %127 = vst [vmem:[#allocation7 + $0x8] sm:$0xff] %v123_v7 }
 0x105   :  { %224 = shalt.err (!%p221_p6)
}
 0x106   :  { %s225_s10 = scalar_lea.hbm %s307_s2, 256 }
 0x107   :  { %p226_p7 = scmp.ne.s32.totalorder %s307_s2, %s225_s10  ;;  %p229_p8 = scmp.lt.u32.totalorder %s225_s10, %s307_s2 }
 0x109   :  { %p231_p9 = pnand %p229_p8, %p226_p7 }
 0x10b   :  { %234 = shalt.err (!%p231_p9)
}
 0x10c   :  { %137 = dma.vmem_to_hbm [thread:$0]  %s135_s7, 256, %s307_s2, [#allocation4]  }
 0x10d   :  { %239 = dma.done.wait [#allocation4], 256  }
 0x10e   :  { %240 = vsyncadd [#allocation4], 4294967040 }
 0x10f   :  { %141 = vsyncpa [#allocation3], 1 }
 0x110   :  { %142 = vsyncpa [#allocation6], 1 }
 0x111   :  { %143 = vsyncpa [#allocation4], 1 }

</bundles_post_ra>
